<compile_context>
chip_gen: v7x
topology: tpu7x:2x2x1
jax: 0.10.0
libtpu: 0.0.40
codegen_flags: <defaults>
</compile_context>

<pallas_src>
import functools

import jax
import jax.numpy as jnp
from jax.experimental import pallas as pl
from jax.experimental.pallas import tpu as pltpu


NZ = 128
H1 = 256
H2 = 512
OUT = 784           # 28 * 28 (logical output width)
OUT_PAD = 896       # 7 * 128 (lane-dense padded output width)


def _round_up(x, m):
    return ((x + m - 1) // m) * m


def generator_kernel(x_ref, w1_ref, b1_ref, w2_ref, b2_ref, w3_ref, b3_ref, o_ref):
    # Three MXU matmuls (bf16 operands, f32 accumulation) + fused epilogues.
    x = x_ref[...]                                                        # bf16 [TB, 128]
    h1 = jnp.dot(x, w1_ref[...], preferred_element_type=jnp.float32)      # f32 [TB, 256]
    h1 = jnp.maximum(h1 + b1_ref[...], 0.0).astype(jnp.bfloat16)
    h2 = jnp.dot(h1, w2_ref[...], preferred_element_type=jnp.float32)     # f32 [TB, 512]
    h2 = jnp.maximum(h2 + b2_ref[...], 0.0).astype(jnp.bfloat16)
    h3 = jnp.dot(h2, w3_ref[...], preferred_element_type=jnp.float32)     # f32 [TB, 896]
    o_ref[...] = jnp.tanh(h3 + b3_ref[...])


@jax.jit
def generator_forward(x, params):
    """x: [B, NZ] float32 -> [B, 1, 28, 28] float32."""
    w1, b1, w2, b2, w3, b3 = params
    B = x.shape[0]

    # Batch tile: up to 256 rows per grid step, multiple of 8 (sublane rule).
    TB = min(256, _round_up(B, 8))
    B_pad = _round_up(B, TB)
    if B_pad != B:
        x = jnp.pad(x, ((0, B_pad - B), (0, 0)))

    # bf16 matmul operands; biases stay f32 (accumulator / epilogue dtype).
    x_bf = x.astype(jnp.bfloat16)
    w1_bf = w1.astype(jnp.bfloat16)
    w2_bf = w2.astype(jnp.bfloat16)
    # Pad the last layer to a lane-dense 896-wide output (zeros in the pad).
    w3_bf = jnp.pad(w3.astype(jnp.bfloat16), ((0, 0), (0, OUT_PAD - OUT)))
    b3_pad = jnp.pad(b3, ((0, 0), (0, OUT_PAD - OUT)))

    grid = (B_pad // TB,)

    batch_spec = lambda shape: pl.BlockSpec(shape, lambda i: (i, 0))
    resident_spec = lambda shape: pl.BlockSpec(shape, lambda i: (0, 0))

    cost = pl.CostEstimate(
        flops=2 * B_pad * (NZ * H1 + H1 * H2 + H2 * OUT),
        transcendentals=B_pad * OUT,
        bytes_accessed=(
            B_pad * NZ * 2                       # x (bf16)
            + (NZ * H1 + H1 * H2 + H2 * OUT_PAD) * 2   # weights (bf16)
            + (H1 + H2 + OUT_PAD) * 4            # biases (f32)
            + B_pad * OUT_PAD * 4                # output (f32)
        ),
    )

    out_flat = pl.pallas_call(
        generator_kernel,
        out_shape=jax.ShapeDtypeStruct((B_pad, OUT_PAD), jnp.float32),
        grid=grid,
        in_specs=[
            batch_spec((TB, NZ)),          # x tile, pipelined over batch
            resident_spec((NZ, H1)),       # weights / biases: constant block
            resident_spec((1, H1)),        #   index => stay resident in VMEM
            resident_spec((H1, H2)),
            resident_spec((1, H2)),
            resident_spec((H2, OUT_PAD)),
            resident_spec((1, OUT_PAD)),
        ],
        out_specs=batch_spec((TB, OUT_PAD)),
        compiler_params=pltpu.CompilerParams(
            dimension_semantics=("parallel",),   # megacore sharding on v7x
            vmem_limit_bytes=32 << 20,           # weights ~1.3 MiB + tiles; ample headroom
        ),
        cost_estimate=cost,
    )(x_bf, w1_bf, b1, w2_bf, b2, w3_bf, b3_pad)

    # Drop batch padding + lane padding, then match torch's .view(-1, 1, 28, 28).
    return out_flat[:B, :OUT].reshape(-1, 1, 28, 28)


def init_params(key):
    """Deterministic init mirroring torch.nn.Linear default: U(-1/sqrt(fan_in), 1/sqrt(fan_in))."""
    ks = jax.random.split(key, 6)

    def linear(kw, kb, fan_in, fan_out):
        bound = 1.0 / jnp.sqrt(jnp.float32(fan_in))
        w = jax.random.uniform(kw, (fan_in, fan_out), jnp.float32, -bound, bound)
        b = jax.random.uniform(kb, (1, fan_out), jnp.float32, -bound, bound)
        return w, b

    w1, b1 = linear(ks[0], ks[1], NZ, H1)
    w2, b2 = linear(ks[2], ks[3], H1, H2)
    w3, b3 = linear(ks[4], ks[5], H2, OUT)
    return (w1, b1, w2, b2, w3, b3)


if __name__ == "__main__":
    key = jax.random.PRNGKey(0)
    k_param, k_x = jax.random.split(key)

    params = init_params(k_param)
    batch = 8
    x = jax.random.normal(k_x, (batch, NZ), jnp.float32)

    y = generator_forward(x, params)
    jax.block_until_ready(y)

    assert y.shape == (batch, 1, 28, 28), y.shape
    assert y.dtype == jnp.float32
    # Tanh output range sanity check.
    assert bool(jnp.all(jnp.abs(y) <= 1.0 + 1e-6))

    # Reference check against plain-JAX f32 forward (bf16 matmuls => loose tol).
    w1, b1, w2, b2, w3, b3 = params
    ref = jnp.maximum(x @ w1 + b1, 0.0)
    ref = jnp.maximum(ref @ w2 + b2, 0.0)
    ref = jnp.tanh(ref @ w3 + b3).reshape(-1, 1, 28, 28)
    assert bool(jnp.max(jnp.abs(y - ref)) < 5e-2)

    print("KERNEL_OK")
</pallas_src>

<mosaic_0001>
module attributes {stable_mosaic.version = 11 : i64} {
  func.func @generator_kernel(%arg0: i32, %arg1: memref<8x128xbf16, #tpu.memory_space<vmem>>, %arg2: memref<128x256xbf16, #tpu.memory_space<vmem>>, %arg3: memref<1x256xf32, #tpu.memory_space<vmem>>, %arg4: memref<256x512xbf16, #tpu.memory_space<vmem>>, %arg5: memref<1x512xf32, #tpu.memory_space<vmem>>, %arg6: memref<512x896xbf16, #tpu.memory_space<vmem>>, %arg7: memref<1x896xf32, #tpu.memory_space<vmem>>, %arg8: memref<8x896xf32, #tpu.memory_space<vmem>>) attributes {dimension_semantics = [#tpu.dimension_semantics<parallel>], iteration_bounds = array<i64: 1>, scalar_prefetch = 0 : i64, scratch_operands = 0 : i64, tpu.core_type = #tpu.core_type<tc>, window_params = [{transform_indices = @transform_0, window_bounds = array<i64: 8, 128>}, {pipeline_mode = #tpu.pipeline_mode<synchronous>, transform_indices = @transform_1, window_bounds = array<i64: 128, 256>}, {pipeline_mode = #tpu.pipeline_mode<synchronous>, transform_indices = @transform_2, window_bounds = array<i64: 1, 256>}, {pipeline_mode = #tpu.pipeline_mode<synchronous>, transform_indices = @transform_3, window_bounds = array<i64: 256, 512>}, {pipeline_mode = #tpu.pipeline_mode<synchronous>, transform_indices = @transform_4, window_bounds = array<i64: 1, 512>}, {pipeline_mode = #tpu.pipeline_mode<synchronous>, transform_indices = @transform_5, window_bounds = array<i64: 512, 896>}, {pipeline_mode = #tpu.pipeline_mode<synchronous>, transform_indices = @transform_6, window_bounds = array<i64: 1, 896>}, {transform_indices = @transform_7, window_bounds = array<i64: 8, 896>}]} {
    %c0 = arith.constant 0 : index
    %c0_0 = arith.constant 0 : index
    %0 = vector.load %arg1[%c0, %c0_0] : memref<8x128xbf16, #tpu.memory_space<vmem>>, vector<8x128xbf16>
    %c0_1 = arith.constant 0 : index
    %c0_2 = arith.constant 0 : index
    %1 = vector.load %arg2[%c0_1, %c0_2] : memref<128x256xbf16, #tpu.memory_space<vmem>>, vector<128x256xbf16>
    %cst = arith.constant dense<0.000000e+00> : vector<8x256xf32>
    %2 = tpu.matmul %0, %1, %cst {dimension_numbers = #tpu.dot_dimension_numbers<[1], [0], [0], [1], [0, 0, 1, 1], [], []>} : vector<8x128xbf16>, vector<128x256xbf16>, vector<8x256xf32> -> vector<8x256xf32>
    %c0_3 = arith.constant 0 : index
    %c0_4 = arith.constant 0 : index
    %3 = vector.load %arg3[%c0_3, %c0_4] : memref<1x256xf32, #tpu.memory_space<vmem>>, vector<1x256xf32>
    %4 = vector.broadcast %3 : vector<1x256xf32> to vector<8x256xf32>
    %5 = arith.addf %2, %4 : vector<8x256xf32>
    %cst_5 = arith.constant 0.000000e+00 : f32
    %6 = vector.broadcast %cst_5 : f32 to vector<8x256xf32>
    %7 = arith.maximumf %5, %6 : vector<8x256xf32>
    %8 = arith.truncf %7 : vector<8x256xf32> to vector<8x256xbf16>
    %c0_6 = arith.constant 0 : index
    %c0_7 = arith.constant 0 : index
    %9 = vector.load %arg4[%c0_6, %c0_7] : memref<256x512xbf16, #tpu.memory_space<vmem>>, vector<256x512xbf16>
    %cst_8 = arith.constant dense<0.000000e+00> : vector<8x512xf32>
    %10 = tpu.matmul %8, %9, %cst_8 {dimension_numbers = #tpu.dot_dimension_numbers<[1], [0], [0], [1], [0, 0, 1, 1], [], []>} : vector<8x256xbf16>, vector<256x512xbf16>, vector<8x512xf32> -> vector<8x512xf32>
    %c0_9 = arith.constant 0 : index
    %c0_10 = arith.constant 0 : index
    %11 = vector.load %arg5[%c0_9, %c0_10] : memref<1x512xf32, #tpu.memory_space<vmem>>, vector<1x512xf32>
    %12 = vector.broadcast %11 : vector<1x512xf32> to vector<8x512xf32>
    %13 = arith.addf %10, %12 : vector<8x512xf32>
    %cst_11 = arith.constant 0.000000e+00 : f32
    %14 = vector.broadcast %cst_11 : f32 to vector<8x512xf32>
    %15 = arith.maximumf %13, %14 : vector<8x512xf32>
    %16 = arith.truncf %15 : vector<8x512xf32> to vector<8x512xbf16>
    %c0_12 = arith.constant 0 : index
    %c0_13 = arith.constant 0 : index
    %17 = vector.load %arg6[%c0_12, %c0_13] : memref<512x896xbf16, #tpu.memory_space<vmem>>, vector<512x896xbf16>
    %cst_14 = arith.constant dense<0.000000e+00> : vector<8x896xf32>
    %18 = tpu.matmul %16, %17, %cst_14 {dimension_numbers = #tpu.dot_dimension_numbers<[1], [0], [0], [1], [0, 0, 1, 1], [], []>} : vector<8x512xbf16>, vector<512x896xbf16>, vector<8x896xf32> -> vector<8x896xf32>
    %c0_15 = arith.constant 0 : index
    %c0_16 = arith.constant 0 : index
    %19 = vector.load %arg7[%c0_15, %c0_16] : memref<1x896xf32, #tpu.memory_space<vmem>>, vector<1x896xf32>
    %20 = vector.broadcast %19 : vector<1x896xf32> to vector<8x896xf32>
    %21 = arith.addf %18, %20 : vector<8x896xf32>
    %22 = math.tanh %21 : vector<8x896xf32>
    %c0_17 = arith.constant 0 : index
    %c0_18 = arith.constant 0 : index
    %23 = vector.load %arg8[%c0_17, %c0_18] : memref<8x896xf32, #tpu.memory_space<vmem>>, vector<8x896xf32>
    tpu.vector_store %arg8[%c0_17, %c0_18], %22 {strides = array<i32>} : memref<8x896xf32, #tpu.memory_space<vmem>>, vector<8x896xf32>,
    return
  }
  func.func @transform_0(%arg0: i32) -> (i32, i32) {
    %c0_i32 = arith.constant 0 : i32
    %c0_i32_0 = arith.constant 0 : i32
    return %arg0, %c0_i32 : i32, i32
  }
  func.func @transform_1(%arg0: i32) -> (i32, i32) {
    %c0_i32 = arith.constant 0 : i32
    %c0_i32_0 = arith.constant 0 : i32
    %c0_i32_1 = arith.constant 0 : i32
    return %c0_i32, %c0_i32_0 : i32, i32
  }
  func.func @transform_2(%arg0: i32) -> (i32, i32) {
    %c0_i32 = arith.constant 0 : i32
    %c0_i32_0 = arith.constant 0 : i32
    %c0_i32_1 = arith.constant 0 : i32
    return %c0_i32, %c0_i32_0 : i32, i32
  }
  func.func @transform_3(%arg0: i32) -> (i32, i32) {
    %c0_i32 = arith.constant 0 : i32
    %c0_i32_0 = arith.constant 0 : i32
    %c0_i32_1 = arith.constant 0 : i32
    return %c0_i32, %c0_i32_0 : i32, i32
  }
  func.func @transform_4(%arg0: i32) -> (i32, i32) {
    %c0_i32 = arith.constant 0 : i32
    %c0_i32_0 = arith.constant 0 : i32
    %c0_i32_1 = arith.constant 0 : i32
    return %c0_i32, %c0_i32_0 : i32, i32
  }
  func.func @transform_5(%arg0: i32) -> (i32, i32) {
    %c0_i32 = arith.constant 0 : i32
    %c0_i32_0 = arith.constant 0 : i32
    %c0_i32_1 = arith.constant 0 : i32
    return %c0_i32, %c0_i32_0 : i32, i32
  }
  func.func @transform_6(%arg0: i32) -> (i32, i32) {
    %c0_i32 = arith.constant 0 : i32
    %c0_i32_0 = arith.constant 0 : i32
    %c0_i32_1 = arith.constant 0 : i32
    return %c0_i32, %c0_i32_0 : i32, i32
  }
  func.func @transform_7(%arg0: i32) -> (i32, i32) {
    %c0_i32 = arith.constant 0 : i32
    %c0_i32_0 = arith.constant 0 : i32
    return %arg0, %c0_i32 : i32, i32
  }
}

</mosaic_0001>

<bundles_post_ra>
// kernel: generator_forward.1
= control target key start
LH: loop header
LB: loop body
LE: loop exit
PB: predicated region body
PF: predicated region fallthrough
CT: control target
= control target key end

     0   :  { %v3287_v1 = vmov 0   ;;  %s4333_s1 = inlined_call_operand.vmem [shape: bf16[128,256], index: 1, kind: input, shape index: {}]   ;;  %s4334_s3 = inlined_call_operand.vmem [shape: bf16[256,512], index: 3, kind: input, shape index: {}]   ;;  %s4335_s0 = inlined_call_operand.vmem [shape: bf16[8,128], index: 0, kind: input, shape index: {}]   ;;  %s4336_s5 = inlined_call_operand.vmem [shape: bf16[512,896], index: 5, kind: input, shape index: {}]   ;;  %s4337_s2 = inlined_call_operand.vmem [shape: f32[1,256], index: 2, kind: input, shape index: {}]   ;;  %s4338_s4 = inlined_call_operand.vmem [shape: f32[1,512], index: 4, kind: input, shape index: {}]   ;;  %s4339_s6 = inlined_call_operand.vmem [shape: f32[1,896], index: 6, kind: input, shape index: {}]   ;;  %s4340_s7 = inlined_call_operand.vmem [shape: f32[8,896], index: 7, kind: output, shape index: {}]  }
   0x1   :  { %v2833_v0 = vld [vmem:[%s4333_s1 + $0x4] ss:$8 sps:$4 sm:$0xff]   ;;  %168 = vmatprep.mubr.bf16.mxu0 %v3287_v1  ;;  %v2835_v2 = vld [vmem:[%s4333_s1] ss:$8 sps:$4 sm:$0xff]   ;;  %v2836_v3 = vld [vmem:[%s4333_s1 + $0x14] ss:$8 sps:$4 sm:$0xff]  }
   0x2   :  { %136 = vmatprep.subr.bf16.mxu0 %v2833_v0  ;;  %v2838_v4 = vld [vmem:[%s4333_s1 + $0x10] ss:$8 sps:$4 sm:$0xff]   ;;  %v2839_v5 = vld [vmem:[%s4333_s1 + $0x24] ss:$8 sps:$4 sm:$0xff]   ;;  %v2841_v6 = vld [vmem:[%s4333_s1 + $0x20] ss:$8 sps:$4 sm:$0xff]  }
   0x3   :  { %137 = vmatpush1.bf16.msra.mxu0 %v2835_v2  ;;  %v2842_v7 = vld [vmem:[%s4333_s1 + $0x34] ss:$8 sps:$4 sm:$0xff]   ;;  %v2844_v8 = vld [vmem:[%s4333_s1 + $0x30] ss:$8 sps:$4 sm:$0xff]   ;;  %v2845_v10 = vld [vmem:[%s4333_s1 + $0x44] ss:$8 sps:$4 sm:$0xff]  }
   0x4   :  { %138 = vmatprep.subr.bf16.mxu0 %v2836_v3  ;;  %v2857_v9 = vld [vmem:[%s4334_s3 + $0x4] ss:$16 sps:$4 sm:$0xff]   ;;  %v2862_v11 = vld [vmem:[%s4334_s3] ss:$16 sps:$4 sm:$0xff]   ;;  %v2861_v26 = vld [vmem:[%s4334_s3 + $0xc] ss:$16 sps:$4 sm:$0xff]  }
   0x5   :  { %587 = vmatprep.subr.bf16.mxu1 %v2857_v9  ;;  %v2863_v12 = vld [vmem:[%s4334_s3 + $0x24] ss:$16 sps:$4 sm:$0xff]   ;;  %v2847_v13 = vld [vmem:[%s4333_s1 + $0x40] ss:$8 sps:$4 sm:$0xff]   ;;  %v2850_v17 = vld [vmem:[%s4333_s1 + $0x50] ss:$8 sps:$4 sm:$0xff]  }
   0x6   :  { %v2848_v14 = vld [vmem:[%s4333_s1 + $0x54] ss:$8 sps:$4 sm:$0xff]   ;;  %588 = vmatpush1.bf16.msra.mxu1 %v2862_v11  ;;  %v2868_v15 = vld [vmem:[%s4334_s3 + $0x20] ss:$16 sps:$4 sm:$0xff]   ;;  %v2851_v18 = vld [vmem:[%s4333_s1 + $0x64] ss:$8 sps:$4 sm:$0xff]  }
   0x7   :  { %139 = vmatpush1.bf16.msra.mxu0 %v2838_v4  ;;  %589 = vmatprep.subr.bf16.mxu1 %v2863_v12  ;;  %v2869_v16 = vld [vmem:[%s4334_s3 + $0x44] ss:$16 sps:$4 sm:$0xff]   ;;  %v2874_v19 = vld [vmem:[%s4334_s3 + $0x40] ss:$16 sps:$4 sm:$0xff]   ;;  %v2859_v30 = vld [vmem:[%s4334_s3 + $0x8] ss:$16 sps:$4 sm:$0xff]  }
   0x8   :  { %140 = vmatprep.subr.bf16.mxu0 %v2839_v5  ;;  %v2875_v20 = vld [vmem:[%s4334_s3 + $0x64] ss:$16 sps:$4 sm:$0xff]   ;;  %v2853_v21 = vld [vmem:[%s4333_s1 + $0x60] ss:$8 sps:$4 sm:$0xff]   ;;  %v2856_v25 = vld [vmem:[%s4333_s1 + $0x70] ss:$8 sps:$4 sm:$0xff]  }
   0x9   :  { %v2854_v22 = vld [vmem:[%s4333_s1 + $0x74] ss:$8 sps:$4 sm:$0xff]   ;;  %v2880_v23 = vld [vmem:[%s4334_s3 + $0x60] ss:$16 sps:$4 sm:$0xff]   ;;  %v2865_v34 = vld [vmem:[%s4334_s3 + $0x28] ss:$16 sps:$4 sm:$0xff]  }
   0xa   :  { %590 = vmatpush1.bf16.msra.mxu1 %v2868_v15  ;;  %v2881_v24 = vld [vmem:[%s4334_s3 + $0x84] ss:$16 sps:$4 sm:$0xff]   ;;  %v2886_v27 = vld [vmem:[%s4334_s3 + $0x80] ss:$16 sps:$4 sm:$0xff]   ;;  %v2867_v31 = vld [vmem:[%s4334_s3 + $0x2c] ss:$16 sps:$4 sm:$0xff]  }
   0xb   :  { %141 = vmatpush1.bf16.msra.mxu0 %v2841_v6  ;;  %591 = vmatprep.subr.bf16.mxu1 %v2869_v16  ;;  %v2887_v28 = vld [vmem:[%s4334_s3 + $0xa4] ss:$16 sps:$4 sm:$0xff]   ;;  %v27_v29 = vld [vmem:[%s4335_s0] sm:$0xf]  ;;  %v2873_v35 = vld [vmem:[%s4334_s3 + $0x4c] ss:$16 sps:$4 sm:$0xff]  }
   0xc   :  { %142 = vmatprep.subr.bf16.mxu0 %v2842_v7  ;;  %v2892_v32 = vld [vmem:[%s4334_s3 + $0xa0] ss:$16 sps:$4 sm:$0xff]   ;;  %v2893_v33 = vld [vmem:[%s4334_s3 + $0xc4] ss:$16 sps:$4 sm:$0xff]   ;;  %v2871_v38 = vld [vmem:[%s4334_s3 + $0x48] ss:$16 sps:$4 sm:$0xff]  }
   0xd   :  { %v2898_v36 = vld [vmem:[%s4334_s3 + $0xc0] ss:$16 sps:$4 sm:$0xff]   ;;  %v2899_v37 = vld [vmem:[%s4334_s3 + $0xe4] ss:$16 sps:$4 sm:$0xff]   ;;  %v2879_v39 = vld [vmem:[%s4334_s3 + $0x6c] ss:$16 sps:$4 sm:$0xff]  }
   0xe   :  { %592 = vmatpush1.bf16.msra.mxu1 %v2874_v19  ;;  %v2904_v40 = vld [vmem:[%s4334_s3 + $0xe0] ss:$16 sps:$4 sm:$0xff]   ;;  %v2905_v41 = vld [vmem:[%s4334_s3 + $0x104] ss:$16 sps:$4 sm:$0xff]   ;;  %v2877_v42 = vld [vmem:[%s4334_s3 + $0x68] ss:$16 sps:$4 sm:$0xff]  }
   0xf   :  { %143 = vmatpush1.bf16.msra.mxu0 %v2844_v8  ;;  %593 = vmatprep.subr.bf16.mxu1 %v2875_v20  ;;  %v2885_v43 = vld [vmem:[%s4334_s3 + $0x8c] ss:$16 sps:$4 sm:$0xff]   ;;  %v2910_v44 = vld [vmem:[%s4334_s3 + $0x100] ss:$16 sps:$4 sm:$0xff]   ;;  %v2911_v45 = vld [vmem:[%s4334_s3 + $0x124] ss:$16 sps:$4 sm:$0xff]   ;;  %v46_v20 = vlaneseq }
  0x10   :  { %144 = vmatprep.subr.bf16.mxu0 %v2845_v10  ;;  %v2883_v46 = vld [vmem:[%s4334_s3 + $0x88] ss:$16 sps:$4 sm:$0xff]   ;;  %v2916_v47 = vld [vmem:[%s4334_s3 + $0x120] ss:$16 sps:$4 sm:$0xff]   ;;  %v2891_v48 = vld [vmem:[%s4334_s3 + $0xac] ss:$16 sps:$4 sm:$0xff]  }
  0x11   :  { %v2917_v49 = vld [vmem:[%s4334_s3 + $0x144] ss:$16 sps:$4 sm:$0xff]   ;;  %v2889_v50 = vld [vmem:[%s4334_s3 + $0xa8] ss:$16 sps:$4 sm:$0xff]   ;;  %v2922_v51 = vld [vmem:[%s4334_s3 + $0x140] ss:$16 sps:$4 sm:$0xff]  }
  0x12   :  { %594 = vmatpush1.bf16.msra.mxu1 %v2880_v23  ;;  %v2897_v52 = vld [vmem:[%s4334_s3 + $0xcc] ss:$16 sps:$4 sm:$0xff]   ;;  %v2923_v53 = vld [vmem:[%s4334_s3 + $0x164] ss:$16 sps:$4 sm:$0xff]   ;;  %v2895_v54 = vld [vmem:[%s4334_s3 + $0xc8] ss:$16 sps:$4 sm:$0xff]  }
  0x13   :  { %145 = vmatpush1.bf16.msra.mxu0 %v2847_v13  ;;  %595 = vmatprep.subr.bf16.mxu1 %v2881_v24  ;;  %v2928_v55 = vld [vmem:[%s4334_s3 + $0x160] ss:$16 sps:$4 sm:$0xff]   ;;  %v2903_v56 = vld [vmem:[%s4334_s3 + $0xec] ss:$16 sps:$4 sm:$0xff]   ;;  %v2929_v57 = vld [vmem:[%s4334_s3 + $0x184] ss:$16 sps:$4 sm:$0xff]  }
  0x14   :  { %146 = vmatprep.subr.bf16.mxu0 %v2848_v14  ;;  %v2901_v58 = vld [vmem:[%s4334_s3 + $0xe8] ss:$16 sps:$4 sm:$0xff]   ;;  %v2934_v59 = vld [vmem:[%s4334_s3 + $0x180] ss:$16 sps:$4 sm:$0xff]   ;;  %v2909_v60 = vld [vmem:[%s4334_s3 + $0x10c] ss:$16 sps:$4 sm:$0xff]  }
  0x15   :  { %v2935_v61 = vld [vmem:[%s4334_s3 + $0x1a4] ss:$16 sps:$4 sm:$0xff]   ;;  %v2907_v62 = vld [vmem:[%s4334_s3 + $0x108] ss:$16 sps:$4 sm:$0xff]   ;;  %v2940_v63 = vld [vmem:[%s4334_s3 + $0x1a0] ss:$16 sps:$4 sm:$0xff]  }
  0x16   :  { %596 = vmatpush1.bf16.msra.mxu1 %v2886_v27  ;;  %v2915_v0 = vld [vmem:[%s4334_s3 + $0x12c] ss:$16 sps:$4 sm:$0xff]   ;;  %v2913_v1 = vld [vmem:[%s4334_s3 + $0x128] ss:$16 sps:$4 sm:$0xff]   ;;  %v2941_v10 = vld [vmem:[%s4334_s3 + $0x1c4] ss:$16 sps:$4 sm:$0xff]  }
  0x17   :  { %147 = vmatpush1.bf16.msra.mxu0 %v2850_v17  ;;  %597 = vmatprep.subr.bf16.mxu1 %v2887_v28  ;;  %v2921_v2 = vld [vmem:[%s4334_s3 + $0x14c] ss:$16 sps:$4 sm:$0xff]   ;;  %v2919_v3 = vld [vmem:[%s4334_s3 + $0x148] ss:$16 sps:$4 sm:$0xff]   ;;  %v2946_v13 = vld [vmem:[%s4334_s3 + $0x1c0] ss:$16 sps:$4 sm:$0xff]  }
  0x18   :  { %148 = vmatprep.subr.bf16.mxu0 %v2851_v18  ;;  %v2927_v4 = vld [vmem:[%s4334_s3 + $0x16c] ss:$16 sps:$4 sm:$0xff]   ;;  %v2925_v5 = vld [vmem:[%s4334_s3 + $0x168] ss:$16 sps:$4 sm:$0xff]   ;;  %v2947_v14 = vld [vmem:[%s4334_s3 + $0x1e4] ss:$16 sps:$4 sm:$0xff]  }
  0x19   :  { %v2933_v6 = vld [vmem:[%s4334_s3 + $0x18c] ss:$16 sps:$4 sm:$0xff]   ;;  %v2931_v7 = vld [vmem:[%s4334_s3 + $0x188] ss:$16 sps:$4 sm:$0xff]   ;;  %v2952_v17 = vld [vmem:[%s4334_s3 + $0x1e0] ss:$16 sps:$4 sm:$0xff]  }
  0x1a   :  { %598 = vmatpush1.bf16.msra.mxu1 %v2892_v32  ;;  %v2939_v8 = vld [vmem:[%s4334_s3 + $0x1ac] ss:$16 sps:$4 sm:$0xff]   ;;  %v2937_v9 = vld [vmem:[%s4334_s3 + $0x1a8] ss:$16 sps:$4 sm:$0xff]   ;;  %v2955_v18 = vld [vmem:[%s4336_s5 + $0x4] ss:$28 sps:$4 sm:$0xff]  }
  0x1b   :  { %149 = vmatpush1.bf16.msra.mxu0 %v2853_v21  ;;  %599 = vmatprep.subr.bf16.mxu1 %v2893_v33  ;;  %v2945_v11 = vld [vmem:[%s4334_s3 + $0x1cc] ss:$16 sps:$4 sm:$0xff]   ;;  %v2943_v12 = vld [vmem:[%s4334_s3 + $0x1c8] ss:$16 sps:$4 sm:$0xff]   ;;  %v3577_v21 = vshrl.u32 %v46_v20, 7 }
  0x1c   :  { %150 = vmatprep.subr.bf16.mxu0 %v2854_v22  ;;  %v2951_v15 = vld [vmem:[%s4334_s3 + $0x1ec] ss:$16 sps:$4 sm:$0xff]   ;;  %v2949_v16 = vld [vmem:[%s4334_s3 + $0x1e8] ss:$16 sps:$4 sm:$0xff]   ;;  %v44_v23 = vld [vmem:[%s4337_s2] sm:$0x3] }
  0x1d   :  { %v2958_v19 = vld [vmem:[%s4336_s5 + $0xc] ss:$28 sps:$4 sm:$0xff]   ;;  %v3580_v22 = vsub.s32 0, %v3577_v21  ;;  %v3586_v24 = vsub.s32 1, %v3577_v21 }
  0x1e   :  { %600 = vmatpush1.bf16.msra.mxu1 %v2898_v36  ;;  %v2953_v36 = vld [vmem:[%s4336_s5] ss:$28 sps:$4 sm:$0xff]   ;;  %v3030_v20 = vld [vmem:[%s4336_s5 + $0x2ac] ss:$28 sps:$4 sm:$0xff]  }
  0x1f   :  { %151 = vmatpush1.bf16.msra.mxu0 %v2856_v25  ;;  %601 = vmatprep.subr.bf16.mxu1 %v2899_v37  ;;  %v49_v25 = vrot.slane %v44_v23, %v3580_v22  ;;  %v2956_v37 = vld [vmem:[%s4336_s5 + $0x8] ss:$28 sps:$4 sm:$0xff]  }
  0x20   :  { %628 = vmatprep.subr.bf16.mxu0 %v2861_v26  ;;  %v53_v26 = vrot.slane %v44_v23, %v3586_v24  ;;  %v3025_v23 = vld [vmem:[%s4336_s5 + $0x2a0] ss:$28 sps:$4 sm:$0xff]  }
  0x22   :  { %169 = vmatmul.mubr.bf16.vlgmr.msra.gmra.mrb[0].mxu0 %v27_v29  ;;  %602 = vmatpush1.bf16.msra.mxu1 %v2904_v40  ;;  %v2964_v40 = vld [vmem:[%s4336_s5 + $0x44] ss:$28 sps:$4 sm:$0xff]  }
  0x23   :  { %629 = vmatpush1.bf16.msra.mxu0 %v2859_v30  ;;  %603 = vmatprep.subr.bf16.mxu1 %v2905_v41  ;;  %v2959_v41 = vld [vmem:[%s4336_s5 + $0x38] ss:$28 sps:$4 sm:$0xff]  }
  0x24   :  { %630 = vmatprep.subr.bf16.mxu0 %v2867_v31 }
  0x26   :  { %604 = vmatpush1.bf16.msra.mxu1 %v2910_v44  ;;  %v2970_v44 = vld [vmem:[%s4336_s5 + $0x7c] ss:$28 sps:$4 sm:$0xff]  }
  0x27   :  { %631 = vmatpush1.bf16.msra.mxu0 %v2865_v34  ;;  %605 = vmatprep.subr.bf16.mxu1 %v2911_v45  ;;  %v2965_v45 = vld [vmem:[%s4336_s5 + $0x70] ss:$28 sps:$4 sm:$0xff]  }
  0x28   :  { %632 = vmatprep.subr.bf16.mxu0 %v2873_v35 }
  0x2a   :  { %606 = vmatpush1.bf16.msra.mxu1 %v2916_v47  ;;  %v2973_v47 = vld [vmem:[%s4336_s5 + $0xac] ss:$28 sps:$4 sm:$0xff]  }
  0x2b   :  { %633 = vmatpush1.bf16.msra.mxu0 %v2871_v38  ;;  %607 = vmatprep.subr.bf16.mxu1 %v2917_v49  ;;  %v2971_v49 = vld [vmem:[%s4336_s5 + $0xa8] ss:$28 sps:$4 sm:$0xff]  }
  0x2c   :  { %634 = vmatprep.subr.bf16.mxu0 %v2879_v39  ;;  %v2961_v39 = vld [vmem:[%s4336_s5 + $0x3c] ss:$28 sps:$4 sm:$0xff]  }
  0x2e   :  { %608 = vmatpush1.bf16.msra.mxu1 %v2922_v51  ;;  %v2979_v51 = vld [vmem:[%s4336_s5 + $0xe4] ss:$28 sps:$4 sm:$0xff]  }
  0x2f   :  { %635 = vmatpush1.bf16.msra.mxu0 %v2877_v42  ;;  %609 = vmatprep.subr.bf16.mxu1 %v2923_v53  ;;  %v2962_v42 = vld [vmem:[%s4336_s5 + $0x40] ss:$28 sps:$4 sm:$0xff]  }
  0x30   :  { %636 = vmatprep.subr.bf16.mxu0 %v2885_v43  ;;  %v2967_v43 = vld [vmem:[%s4336_s5 + $0x74] ss:$28 sps:$4 sm:$0xff]   ;;  %v2977_v53 = vld [vmem:[%s4336_s5 + $0xe0] ss:$28 sps:$4 sm:$0xff]  }
  0x32   :  { %610 = vmatpush1.bf16.msra.mxu1 %v2928_v55  ;;  %v2985_v55 = vld [vmem:[%s4336_s5 + $0x11c] ss:$28 sps:$4 sm:$0xff]  }
  0x33   :  { %637 = vmatpush1.bf16.msra.mxu0 %v2883_v46  ;;  %611 = vmatprep.subr.bf16.mxu1 %v2929_v57  ;;  %v2968_v46 = vld [vmem:[%s4336_s5 + $0x78] ss:$28 sps:$4 sm:$0xff]  }
  0x34   :  { %638 = vmatprep.subr.bf16.mxu0 %v2891_v48  ;;  %v2976_v48 = vld [vmem:[%s4336_s5 + $0xb4] ss:$28 sps:$4 sm:$0xff]  }
  0x35   :  { %v2983_v57 = vld [vmem:[%s4336_s5 + $0x118] ss:$28 sps:$4 sm:$0xff]  }
  0x36   :  { %612 = vmatpush1.bf16.msra.mxu1 %v2934_v59  ;;  %v2991_v59 = vld [vmem:[%s4336_s5 + $0x154] ss:$28 sps:$4 sm:$0xff]  }
  0x37   :  { %639 = vmatpush1.bf16.msra.mxu0 %v2889_v50  ;;  %613 = vmatprep.subr.bf16.mxu1 %v2935_v61  ;;  %v2974_v50 = vld [vmem:[%s4336_s5 + $0xb0] ss:$28 sps:$4 sm:$0xff]  }
  0x38   :  { %640 = vmatprep.subr.bf16.mxu0 %v2897_v52  ;;  %v2982_v52 = vld [vmem:[%s4336_s5 + $0xec] ss:$28 sps:$4 sm:$0xff]  }
  0x39   :  { %v2989_v61 = vld [vmem:[%s4336_s5 + $0x150] ss:$28 sps:$4 sm:$0xff]  }
  0x3a   :  { %614 = vmatpush1.bf16.msra.mxu1 %v2940_v63  ;;  %v2997_v63 = vld [vmem:[%s4336_s5 + $0x18c] ss:$28 sps:$4 sm:$0xff]  }
  0x3b   :  { %641 = vmatpush1.bf16.msra.mxu0 %v2895_v54  ;;  %615 = vmatprep.subr.bf16.mxu1 %v2941_v10  ;;  %v2980_v54 = vld [vmem:[%s4336_s5 + $0xe8] ss:$28 sps:$4 sm:$0xff]   ;;  %v3010_v10 = vld [vmem:[%s4336_s5 + $0x200] ss:$28 sps:$4 sm:$0xff]  }
  0x3c   :  { %642 = vmatprep.subr.bf16.mxu0 %v2903_v56  ;;  %v2988_v56 = vld [vmem:[%s4336_s5 + $0x124] ss:$28 sps:$4 sm:$0xff]  }
  0x3e   :  { %616 = vmatpush1.bf16.msra.mxu1 %v2946_v13  ;;  %v3013_v13 = vld [vmem:[%s4336_s5 + $0x230] ss:$28 sps:$4 sm:$0xff]  }
  0x3f   :  { %643 = vmatpush1.bf16.msra.mxu0 %v2901_v58  ;;  %617 = vmatprep.subr.bf16.mxu1 %v2947_v14  ;;  %v2986_v58 = vld [vmem:[%s4336_s5 + $0x120] ss:$28 sps:$4 sm:$0xff]   ;;  %v3016_v14 = vld [vmem:[%s4336_s5 + $0x238] ss:$28 sps:$4 sm:$0xff]  }
  0x40   :  { %644 = vmatprep.subr.bf16.mxu0 %v2909_v60  ;;  %v2994_v60 = vld [vmem:[%s4336_s5 + $0x15c] ss:$28 sps:$4 sm:$0xff]  }
  0x42   :  { %618 = vmatpush1.bf16.msra.mxu1 %v2952_v17  ;;  %v3019_v17 = vld [vmem:[%s4336_s5 + $0x268] ss:$28 sps:$4 sm:$0xff]  }
  0x43   :  { %645 = vmatpush1.bf16.msra.mxu0 %v2907_v62  ;;  %2122 = vmatprep.subr.bf16.mxu1 %v2955_v18  ;;  %v2992_v62 = vld [vmem:[%s4336_s5 + $0x158] ss:$28 sps:$4 sm:$0xff]   ;;  %v3022_v18 = vld [vmem:[%s4336_s5 + $0x270] ss:$28 sps:$4 sm:$0xff]  }
  0x44   :  { %646 = vmatprep.subr.bf16.mxu0 %v2915_v0  ;;  %v3000_v0 = vld [vmem:[%s4336_s5 + $0x194] ss:$28 sps:$4 sm:$0xff]  }
  0x47   :  { %647 = vmatpush1.bf16.msra.mxu0 %v2913_v1  ;;  %v2995_v1 = vld [vmem:[%s4336_s5 + $0x188] ss:$28 sps:$4 sm:$0xff]  }
  0x48   :  { %648 = vmatprep.subr.bf16.mxu0 %v2921_v2  ;;  %v2998_v2 = vld [vmem:[%s4336_s5 + $0x190] ss:$28 sps:$4 sm:$0xff]  }
  0x4b   :  { %649 = vmatpush1.bf16.msra.mxu0 %v2919_v3  ;;  %v3003_v3 = vld [vmem:[%s4336_s5 + $0x1c4] ss:$28 sps:$4 sm:$0xff]  }
  0x4c   :  { %650 = vmatprep.subr.bf16.mxu0 %v2927_v4  ;;  %v3006_v4 = vld [vmem:[%s4336_s5 + $0x1cc] ss:$28 sps:$4 sm:$0xff]  }
  0x4f   :  { %651 = vmatpush1.bf16.msra.mxu0 %v2925_v5  ;;  %v3001_v5 = vld [vmem:[%s4336_s5 + $0x1c0] ss:$28 sps:$4 sm:$0xff]  }
  0x50   :  { %652 = vmatprep.subr.bf16.mxu0 %v2933_v6  ;;  %v3004_v6 = vld [vmem:[%s4336_s5 + $0x1c8] ss:$28 sps:$4 sm:$0xff]  }
  0x53   :  { %653 = vmatpush1.bf16.msra.mxu0 %v2931_v7  ;;  %v3009_v7 = vld [vmem:[%s4336_s5 + $0x1fc] ss:$28 sps:$4 sm:$0xff]  }
  0x54   :  { %654 = vmatprep.subr.bf16.mxu0 %v2939_v8  ;;  %v3012_v8 = vld [vmem:[%s4336_s5 + $0x204] ss:$28 sps:$4 sm:$0xff]  }
  0x57   :  { %655 = vmatpush1.bf16.msra.mxu0 %v2937_v9  ;;  %v3007_v9 = vld [vmem:[%s4336_s5 + $0x1f8] ss:$28 sps:$4 sm:$0xff]  }
  0x58   :  { %656 = vmatprep.subr.bf16.mxu0 %v2945_v11  ;;  %v3015_v11 = vld [vmem:[%s4336_s5 + $0x234] ss:$28 sps:$4 sm:$0xff]  }
  0x5b   :  { %657 = vmatpush1.bf16.msra.mxu0 %v2943_v12  ;;  %v3018_v12 = vld [vmem:[%s4336_s5 + $0x23c] ss:$28 sps:$4 sm:$0xff]  }
  0x5c   :  { %658 = vmatprep.subr.bf16.mxu0 %v2951_v15  ;;  %v3021_v15 = vld [vmem:[%s4336_s5 + $0x26c] ss:$28 sps:$4 sm:$0xff]  }
  0x5f   :  { %659 = vmatpush1.bf16.msra.mxu0 %v2949_v16  ;;  %v3024_v16 = vld [vmem:[%s4336_s5 + $0x274] ss:$28 sps:$4 sm:$0xff]  }
  0x60   :  { %2204 = vmatprep.subr.bf16.mxu0 %v2958_v19  ;;  %v3027_v19 = vld [vmem:[%s4336_s5 + $0x2a4] ss:$28 sps:$4 sm:$0xff]  }
  0xf5   :  { %v170_v27 = vpop.f32.mrb[0].mxu0 }
  0xf6   :  { %v171_v28 = vadd.f32 %v170_v27, %v49_v25  ;;  %v172_v29 = vpop.f32.mrb[1].mxu0  ;;  %v3028_v25 = vld [vmem:[%s4336_s5 + $0x2a8] ss:$28 sps:$4 sm:$0xff]  }
  0xf7   :  { %v173_v30 = vadd.f32 %v172_v29, %v53_v26  ;;  %v174_v31 = vpop.f32.mrb[2].mxu0  ;;  %v3033_v26 = vld [vmem:[%s4336_s5 + $0x2dc] ss:$28 sps:$4 sm:$0xff]   ;;  %v3036_v27 = vld [vmem:[%s4336_s5 + $0x2e4] ss:$28 sps:$4 sm:$0xff]  }
  0xf8   :  { %v177_v32 = vmax.f32 %v171_v28, 0.0  ;;  %v175_v33 = vpop.f32.mrb[3].mxu0  ;;  %v3031_v28 = vld [vmem:[%s4336_s5 + $0x2d8] ss:$28 sps:$4 sm:$0xff]   ;;  %v3034_v29 = vld [vmem:[%s4336_s5 + $0x2e0] ss:$28 sps:$4 sm:$0xff]  }
  0xf9   :  { %v178_v34 = vmax.f32 %v173_v30, 0.0  ;;  %v3039_v30 = vld [vmem:[%s4336_s5 + $0x314] ss:$28 sps:$4 sm:$0xff]   ;;  %v3042_v31 = vld [vmem:[%s4336_s5 + $0x31c] ss:$28 sps:$4 sm:$0xff]  }
  0xfa   :  { %v179_v38 = vpack.c.bf16 %v177_v32, %v177_v32  ;;  %v3037_v32 = vld [vmem:[%s4336_s5 + $0x310] ss:$28 sps:$4 sm:$0xff]   ;;  %v3040_v33 = vld [vmem:[%s4336_s5 + $0x318] ss:$28 sps:$4 sm:$0xff]  }
  0xfb   :  { %v180_v35 = vpack.c.bf16 %v178_v34, %v178_v34  ;;  %v3045_v34 = vld [vmem:[%s4336_s5 + $0x34c] ss:$28 sps:$4 sm:$0xff]  }
  0xfd   :  { %619 = vmatprep.mubr.bf16.mxu1 %v180_v35  ;;  %660 = vmatprep.mubr.bf16.mxu0 %v180_v35  ;;  %v3048_v35 = vld [vmem:[%s4336_s5 + $0x354] ss:$28 sps:$4 sm:$0xff]  }
  0xfe   :  { %620 = vmatmul.mubr.bf16.vlgmr.msra.gmra.mrb[0].mxu1 %v179_v38  ;;  %661 = vmatmul.mubr.bf16.vlgmr.msra.gmra.mrb[4].mxu0 %v179_v38  ;;  %v3051_v38 = vld [vmem:[%s4336_s5 + $0x384] ss:$28 sps:$4 sm:$0xff]  }
  0xff   :  { %2123 = vmatpush1.bf16.msra.mxu1 %v2953_v36  ;;  %2205 = vmatpush1.bf16.msra.mxu0 %v2956_v37  ;;  %v3043_v36 = vld [vmem:[%s4336_s5 + $0x348] ss:$28 sps:$4 sm:$0xff]   ;;  %v3046_v37 = vld [vmem:[%s4336_s5 + $0x350] ss:$28 sps:$4 sm:$0xff]  }
 0x100   :  { %2124 = vmatprep.subr.bf16.mxu1 %v2961_v39  ;;  %2206 = vmatprep.subr.bf16.mxu0 %v2964_v40  ;;  %v3054_v39 = vld [vmem:[%s4336_s5 + $0x38c] ss:$28 sps:$4 sm:$0xff]   ;;  %v3785_v40 = vld [vmem:[%s4338_s4] sm:$0xf] }
 0x103   :  { %2125 = vmatpush1.bf16.msra.mxu1 %v2959_v41  ;;  %2207 = vmatpush1.bf16.msra.mxu0 %v2962_v42  ;;  %v261_v41 = vsub.s32 3, %v3577_v21  ;;  %v250_v42 = vrot.slane %v3785_v40, %v3580_v22 }
 0x104   :  { %2126 = vmatprep.subr.bf16.mxu1 %v2967_v43  ;;  %2208 = vmatprep.subr.bf16.mxu0 %v2970_v44  ;;  %v254_v43 = vrot.slane %v3785_v40, %v3586_v24 }
 0x105   :  { %v262_v44 = vrot.slane %v3785_v40, %v261_v41 }
 0x107   :  { %2127 = vmatpush1.bf16.msra.mxu1 %v2965_v45  ;;  %2209 = vmatpush1.bf16.msra.mxu0 %v2968_v46 }
 0x108   :  { %2128 = vmatprep.subr.bf16.mxu1 %v2973_v47  ;;  %2210 = vmatprep.subr.bf16.mxu0 %v2976_v48 }
 0x10b   :  { %2129 = vmatpush1.bf16.msra.mxu1 %v2971_v49  ;;  %2211 = vmatpush1.bf16.msra.mxu0 %v2974_v50 }
 0x10c   :  { %2130 = vmatprep.subr.bf16.mxu1 %v2979_v51  ;;  %2212 = vmatprep.subr.bf16.mxu0 %v2982_v52 }
 0x10f   :  { %2131 = vmatpush1.bf16.msra.mxu1 %v2977_v53  ;;  %2213 = vmatpush1.bf16.msra.mxu0 %v2980_v54 }
 0x110   :  { %2132 = vmatprep.subr.bf16.mxu1 %v2985_v55  ;;  %2214 = vmatprep.subr.bf16.mxu0 %v2988_v56 }
 0x113   :  { %2133 = vmatpush1.bf16.msra.mxu1 %v2983_v57  ;;  %2215 = vmatpush1.bf16.msra.mxu0 %v2986_v58 }
 0x114   :  { %2134 = vmatprep.subr.bf16.mxu1 %v2991_v59  ;;  %2216 = vmatprep.subr.bf16.mxu0 %v2994_v60  ;;  %v3049_v60 = vld [vmem:[%s4336_s5 + $0x380] ss:$28 sps:$4 sm:$0xff]  }
 0x117   :  { %2135 = vmatpush1.bf16.msra.mxu1 %v2989_v61  ;;  %2217 = vmatpush1.bf16.msra.mxu0 %v2992_v62  ;;  %v3052_v61 = vld [vmem:[%s4336_s5 + $0x388] ss:$28 sps:$4 sm:$0xff]  }
 0x118   :  { %2136 = vmatprep.subr.bf16.mxu1 %v2997_v63  ;;  %2218 = vmatprep.subr.bf16.mxu0 %v3000_v0  ;;  %v3057_v63 = vld [vmem:[%s4336_s5 + $0x3bc] ss:$28 sps:$4 sm:$0xff]   ;;  %v3060_v0 = vld [vmem:[%s4336_s5 + $0x3c4] ss:$28 sps:$4 sm:$0xff]  }
 0x11b   :  { %2137 = vmatpush1.bf16.msra.mxu1 %v2995_v1  ;;  %2219 = vmatpush1.bf16.msra.mxu0 %v2998_v2  ;;  %v3055_v2 = vld [vmem:[%s4336_s5 + $0x3b8] ss:$28 sps:$4 sm:$0xff]  }
 0x11c   :  { %2138 = vmatprep.subr.bf16.mxu1 %v3003_v3  ;;  %2220 = vmatprep.subr.bf16.mxu0 %v3006_v4  ;;  %v3058_v3 = vld [vmem:[%s4336_s5 + $0x3c0] ss:$28 sps:$4 sm:$0xff]   ;;  %v3063_v4 = vld [vmem:[%s4336_s5 + $0x3f4] ss:$28 sps:$4 sm:$0xff]  }
 0x11f   :  { %2139 = vmatpush1.bf16.msra.mxu1 %v3001_v5  ;;  %2221 = vmatpush1.bf16.msra.mxu0 %v3004_v6  ;;  %v3066_v5 = vld [vmem:[%s4336_s5 + $0x3fc] ss:$28 sps:$4 sm:$0xff]   ;;  %v3061_v6 = vld [vmem:[%s4336_s5 + $0x3f0] ss:$28 sps:$4 sm:$0xff]  }
 0x120   :  { %2140 = vmatprep.subr.bf16.mxu1 %v3009_v7  ;;  %2222 = vmatprep.subr.bf16.mxu0 %v3012_v8  ;;  %v3064_v7 = vld [vmem:[%s4336_s5 + $0x3f8] ss:$28 sps:$4 sm:$0xff]   ;;  %v3069_v8 = vld [vmem:[%s4336_s5 + $0x42c] ss:$28 sps:$4 sm:$0xff]  }
 0x123   :  { %2141 = vmatpush1.bf16.msra.mxu1 %v3007_v9  ;;  %2223 = vmatpush1.bf16.msra.mxu0 %v3010_v10  ;;  %v3072_v9 = vld [vmem:[%s4336_s5 + $0x434] ss:$28 sps:$4 sm:$0xff]   ;;  %v3067_v10 = vld [vmem:[%s4336_s5 + $0x428] ss:$28 sps:$4 sm:$0xff]  }
 0x124   :  { %2142 = vmatprep.subr.bf16.mxu1 %v3015_v11  ;;  %2224 = vmatprep.subr.bf16.mxu0 %v3018_v12  ;;  %v3070_v11 = vld [vmem:[%s4336_s5 + $0x430] ss:$28 sps:$4 sm:$0xff]   ;;  %v3075_v12 = vld [vmem:[%s4336_s5 + $0x464] ss:$28 sps:$4 sm:$0xff]  }
 0x127   :  { %2143 = vmatpush1.bf16.msra.mxu1 %v3013_v13  ;;  %2225 = vmatpush1.bf16.msra.mxu0 %v3016_v14  ;;  %v3078_v13 = vld [vmem:[%s4336_s5 + $0x46c] ss:$28 sps:$4 sm:$0xff]   ;;  %v3073_v14 = vld [vmem:[%s4336_s5 + $0x460] ss:$28 sps:$4 sm:$0xff]  }
 0x128   :  { %2144 = vmatprep.subr.bf16.mxu1 %v3021_v15  ;;  %2226 = vmatprep.subr.bf16.mxu0 %v3024_v16  ;;  %v3076_v15 = vld [vmem:[%s4336_s5 + $0x468] ss:$28 sps:$4 sm:$0xff]   ;;  %v3081_v16 = vld [vmem:[%s4336_s5 + $0x49c] ss:$28 sps:$4 sm:$0xff]  }
 0x12b   :  { %2145 = vmatpush1.bf16.msra.mxu1 %v3019_v17  ;;  %2227 = vmatpush1.bf16.msra.mxu0 %v3022_v18  ;;  %v3084_v17 = vld [vmem:[%s4336_s5 + $0x4a4] ss:$28 sps:$4 sm:$0xff]   ;;  %v3079_v18 = vld [vmem:[%s4336_s5 + $0x498] ss:$28 sps:$4 sm:$0xff]  }
 0x12c   :  { %2146 = vmatprep.subr.bf16.mxu1 %v3027_v19  ;;  %2228 = vmatprep.subr.bf16.mxu0 %v3030_v20  ;;  %v3082_v19 = vld [vmem:[%s4336_s5 + $0x4a0] ss:$28 sps:$4 sm:$0xff]   ;;  %v3087_v20 = vld [vmem:[%s4336_s5 + $0x4d4] ss:$28 sps:$4 sm:$0xff]  }
 0x12f   :  { %2147 = vmatpush1.bf16.msra.mxu1 %v3025_v23  ;;  %2229 = vmatpush1.bf16.msra.mxu0 %v3028_v25  ;;  %v3090_v23 = vld [vmem:[%s4336_s5 + $0x4dc] ss:$28 sps:$4 sm:$0xff]   ;;  %v3085_v25 = vld [vmem:[%s4336_s5 + $0x4d0] ss:$28 sps:$4 sm:$0xff]  }
 0x130   :  { %2148 = vmatprep.subr.bf16.mxu1 %v3033_v26  ;;  %2230 = vmatprep.subr.bf16.mxu0 %v3036_v27  ;;  %v3088_v26 = vld [vmem:[%s4336_s5 + $0x4d8] ss:$28 sps:$4 sm:$0xff]   ;;  %v3093_v27 = vld [vmem:[%s4336_s5 + $0x50c] ss:$28 sps:$4 sm:$0xff]  }
 0x133   :  { %2149 = vmatpush1.bf16.msra.mxu1 %v3031_v28  ;;  %2231 = vmatpush1.bf16.msra.mxu0 %v3034_v29  ;;  %v3096_v28 = vld [vmem:[%s4336_s5 + $0x514] ss:$28 sps:$4 sm:$0xff]   ;;  %v3091_v29 = vld [vmem:[%s4336_s5 + $0x508] ss:$28 sps:$4 sm:$0xff]  }
 0x134   :  { %2150 = vmatprep.subr.bf16.mxu1 %v3039_v30  ;;  %2232 = vmatprep.subr.bf16.mxu0 %v3042_v31  ;;  %v3094_v30 = vld [vmem:[%s4336_s5 + $0x510] ss:$28 sps:$4 sm:$0xff]   ;;  %v3099_v31 = vld [vmem:[%s4336_s5 + $0x544] ss:$28 sps:$4 sm:$0xff]  }
 0x137   :  { %2151 = vmatpush1.bf16.msra.mxu1 %v3037_v32  ;;  %2233 = vmatpush1.bf16.msra.mxu0 %v3040_v33  ;;  %v3102_v32 = vld [vmem:[%s4336_s5 + $0x54c] ss:$28 sps:$4 sm:$0xff]   ;;  %v3097_v33 = vld [vmem:[%s4336_s5 + $0x540] ss:$28 sps:$4 sm:$0xff]  }
 0x138   :  { %2152 = vmatprep.subr.bf16.mxu1 %v3045_v34  ;;  %2234 = vmatprep.subr.bf16.mxu0 %v3048_v35  ;;  %v3100_v34 = vld [vmem:[%s4336_s5 + $0x548] ss:$28 sps:$4 sm:$0xff]   ;;  %v3105_v35 = vld [vmem:[%s4336_s5 + $0x57c] ss:$28 sps:$4 sm:$0xff]  }
 0x13b   :  { %2153 = vmatpush1.bf16.msra.mxu1 %v3043_v36  ;;  %2235 = vmatpush1.bf16.msra.mxu0 %v3046_v37  ;;  %v3108_v36 = vld [vmem:[%s4336_s5 + $0x584] ss:$28 sps:$4 sm:$0xff]   ;;  %v3103_v37 = vld [vmem:[%s4336_s5 + $0x578] ss:$28 sps:$4 sm:$0xff]  }
 0x13c   :  { %2163 = vmatprep.subr.bf16.mxu1 %v3051_v38  ;;  %2245 = vmatprep.subr.bf16.mxu0 %v3054_v39  ;;  %v3106_v38 = vld [vmem:[%s4336_s5 + $0x580] ss:$28 sps:$4 sm:$0xff]   ;;  %v3111_v39 = vld [vmem:[%s4336_s5 + $0x5b4] ss:$28 sps:$4 sm:$0xff]  }
 0x1d1   :  { %v621_v45 = vpop.f32.mrb[0].mxu1  ;;  %v3795_v46 = vpop.f32.mrb[4].mxu0 }
 0x1d2   :  { %v622_v47 = vadd.f32 %v621_v45, %v250_v42  ;;  %v623_v48 = vpop.f32.mrb[1].mxu1  ;;  %v664_v49 = vpop.f32.mrb[5].mxu0  ;;  %v3114_v42 = vld [vmem:[%s4336_s5 + $0x5bc] ss:$28 sps:$4 sm:$0xff]   ;;  %v3117_v45 = vld [vmem:[%s4336_s5 + $0x5ec] ss:$28 sps:$4 sm:$0xff]  }
 0x1d3   :  { %v624_v50 = vadd.f32 %v623_v48, %v254_v43  ;;  %v665_v51 = vadd.f32 %v664_v49, %v262_v44  ;;  %v625_v52 = vpop.f32.mrb[2].mxu1  ;;  %v666_v53 = vpop.f32.mrb[6].mxu0  ;;  %v3109_v43 = vld [vmem:[%s4336_s5 + $0x5b0] ss:$28 sps:$4 sm:$0xff]   ;;  %v3112_v44 = vld [vmem:[%s4336_s5 + $0x5b8] ss:$28 sps:$4 sm:$0xff]  }
 0x1d4   :  { %v669_v54 = vmax.f32 %v622_v47, 0.0  ;;  %v626_v55 = vpop.f32.mrb[3].mxu1  ;;  %v667_v56 = vpop.f32.mrb[7].mxu0  ;;  %v3120_v47 = vld [vmem:[%s4336_s5 + $0x5f4] ss:$28 sps:$4 sm:$0xff]  }
 0x1d5   :  { %v670_v57 = vmax.f32 %v624_v50, 0.0  ;;  %v672_v58 = vmax.f32 %v665_v51, 0.0  ;;  %v3115_v48 = vld [vmem:[%s4336_s5 + $0x5e8] ss:$28 sps:$4 sm:$0xff]   ;;  %v3118_v49 = vld [vmem:[%s4336_s5 + $0x5f0] ss:$28 sps:$4 sm:$0xff]  }
 0x1d6   :  { %v3805_v62 = vpack.c.bf16 %v669_v54, %v669_v54  ;;  %v3123_v50 = vld [vmem:[%s4336_s5 + $0x624] ss:$28 sps:$4 sm:$0xff]   ;;  %v3126_v51 = vld [vmem:[%s4336_s5 + $0x62c] ss:$28 sps:$4 sm:$0xff]   ;;  %v257_v54 = vsub.s32 2, %v3577_v21 }
 0x1d7   :  { %v3797_v59 = vpack.c.bf16 %v670_v57, %v670_v57  ;;  %v3815_v1 = vpack.c.bf16 %v672_v58, %v672_v58  ;;  %v3121_v52 = vld [vmem:[%s4336_s5 + $0x620] ss:$28 sps:$4 sm:$0xff]   ;;  %v3124_v53 = vld [vmem:[%s4336_s5 + $0x628] ss:$28 sps:$4 sm:$0xff]   ;;  %v3127_v57 = vld [vmem:[%s4336_s5 + $0x658] ss:$28 sps:$4 sm:$0xff]  }
 0x1d8   :  { %v3129_v55 = vld [vmem:[%s4336_s5 + $0x65c] ss:$28 sps:$4 sm:$0xff]   ;;  %v3132_v56 = vld [vmem:[%s4336_s5 + $0x664] ss:$28 sps:$4 sm:$0xff]  }
 0x1d9   :  { %2154 = vmatprep.mubr.bf16.mxu1 %v3797_v59  ;;  %2236 = vmatprep.mubr.bf16.mxu0 %v3797_v59  ;;  %v3130_v58 = vld [vmem:[%s4336_s5 + $0x660] ss:$28 sps:$4 sm:$0xff]  }
 0x1da   :  { %2155 = vmatmul.mubr.bf16.vlgmr.msra.gmra.mrb[4].mxu1 %v3805_v62  ;;  %2237 = vmatmul.mubr.bf16.vlgmr.msra.gmra.mrb[8].mxu0 %v3805_v62 }
 0x1db   :  { %2164 = vmatpush1.bf16.msra.mxu1 %v3049_v60  ;;  %2246 = vmatpush1.bf16.msra.mxu0 %v3052_v61  ;;  %v258_v60 = vrot.slane %v3785_v40, %v257_v54  ;;  %v3135_v61 = vld [vmem:[%s4336_s5 + $0x694] ss:$28 sps:$4 sm:$0xff]  }
 0x1dc   :  { %2195 = vmatprep.mubr.bf16.mxu1 %v3815_v1  ;;  %2277 = vmatprep.mubr.bf16.mxu0 %v3815_v1  ;;  %v3136_v40 = vld [vmem:[%s4336_s5 + $0x698] ss:$28 sps:$4 sm:$0xff]  }
 0x1dd   :  { %2165 = vmatprep.subr.bf16.mxu1 %v3057_v63  ;;  %2247 = vmatprep.subr.bf16.mxu0 %v3060_v0  ;;  %v3138_v63 = vld [vmem:[%s4336_s5 + $0x69c] ss:$28 sps:$4 sm:$0xff]   ;;  %v3133_v0 = vld [vmem:[%s4336_s5 + $0x690] ss:$28 sps:$4 sm:$0xff]  }
 0x1df   :  { %2166 = vmatpush1.bf16.msra.mxu1 %v3055_v2  ;;  %2248 = vmatpush1.bf16.msra.mxu0 %v3058_v3  ;;  %v663_v2 = vadd.f32 %v3795_v46, %v258_v60  ;;  %v3141_v3 = vld [vmem:[%s4336_s5 + $0x6cc] ss:$28 sps:$4 sm:$0xff]   ;;  %v3203_v60 = vld [vmem:[%s4336_s5 + $0x600] ss:$28 sps:$4 sm:$0xff]  }
 0x1e0   :  { %2167 = vmatprep.subr.bf16.mxu1 %v3063_v4  ;;  %2249 = vmatprep.subr.bf16.mxu0 %v3066_v5  ;;  %v3144_v4 = vld [vmem:[%s4336_s5 + $0x6d4] ss:$28 sps:$4 sm:$0xff]   ;;  %v3139_v5 = vld [vmem:[%s4336_s5 + $0x6c8] ss:$28 sps:$4 sm:$0xff]  }
 0x1e1   :  { %v3142_v46 = vld [vmem:[%s4336_s5 + $0x6d0] ss:$28 sps:$4 sm:$0xff]  }
 0x1e3   :  { %2168 = vmatpush1.bf16.msra.mxu1 %v3061_v6  ;;  %2250 = vmatpush1.bf16.msra.mxu0 %v3064_v7  ;;  %v671_v6 = vmax.f32 %v663_v2, 0.0  ;;  %v3147_v7 = vld [vmem:[%s4336_s5 + $0x14] ss:$28 sps:$4 sm:$0xff]  }
 0x1e4   :  { %2169 = vmatprep.subr.bf16.mxu1 %v3069_v8  ;;  %2251 = vmatprep.subr.bf16.mxu0 %v3072_v9  ;;  %v3148_v8 = vld [vmem:[%s4336_s5 + $0x1d8] ss:$28 sps:$4 sm:$0xff]   ;;  %v3145_v9 = vld [vmem:[%s4336_s5 + $0x10] ss:$28 sps:$4 sm:$0xff]  }
 0x1e5   :  { %v3205_v2 = vld [vmem:[%s4336_s5 + $0x2b0] ss:$28 sps:$4 sm:$0xff]  }
 0x1e7   :  { %2170 = vmatpush1.bf16.msra.mxu1 %v3067_v10  ;;  %2252 = vmatpush1.bf16.msra.mxu0 %v3070_v11  ;;  %v4009_v10 = vpack.c.bf16 %v671_v6, %v671_v6  ;;  %v3149_v11 = vld [vmem:[%s4336_s5 + $0x18] ss:$28 sps:$4 sm:$0xff]   ;;  %v3214_v6 = vld [vmem:[%s4336_s5 + $0x4b0] ss:$28 sps:$4 sm:$0xff]  }
 0x1e8   :  { %2171 = vmatprep.subr.bf16.mxu1 %v3075_v12  ;;  %2253 = vmatprep.subr.bf16.mxu0 %v3078_v13  ;;  %v3152_v12 = vld [vmem:[%s4336_s5 + $0x4c] ss:$28 sps:$4 sm:$0xff]  }
 0x1e9   :  { %v3153_v13 = vld [vmem:[%s4336_s5 + $0x210] ss:$28 sps:$4 sm:$0xff]  }
 0x1eb   :  { %2172 = vmatpush1.bf16.msra.mxu1 %v3073_v14  ;;  %2254 = vmatpush1.bf16.msra.mxu0 %v3076_v15  ;;  %v3150_v14 = vld [vmem:[%s4336_s5 + $0x48] ss:$28 sps:$4 sm:$0xff]   ;;  %v3154_v15 = vld [vmem:[%s4336_s5 + $0x50] ss:$28 sps:$4 sm:$0xff]  }
 0x1ec   :  { %2173 = vmatprep.subr.bf16.mxu1 %v3081_v16  ;;  %2255 = vmatprep.subr.bf16.mxu0 %v3084_v17  ;;  %v3157_v16 = vld [vmem:[%s4336_s5 + $0x84] ss:$28 sps:$4 sm:$0xff]  }
 0x1ed   :  { %v3158_v17 = vld [vmem:[%s4336_s5 + $0x248] ss:$28 sps:$4 sm:$0xff]  }
 0x1ef   :  { %2174 = vmatpush1.bf16.msra.mxu1 %v3079_v18  ;;  %2256 = vmatpush1.bf16.msra.mxu0 %v3082_v19  ;;  %v3155_v18 = vld [vmem:[%s4336_s5 + $0x80] ss:$28 sps:$4 sm:$0xff]  }
 0x1f0   :  { %2175 = vmatprep.subr.bf16.mxu1 %v3087_v20  ;;  %2257 = vmatprep.subr.bf16.mxu0 %v3090_v23  ;;  %v3162_v19 = vld [vmem:[%s4336_s5 + $0xbc] ss:$28 sps:$4 sm:$0xff]  }
 0x1f1   :  { %v3163_v20 = vld [vmem:[%s4336_s5 + $0x280] ss:$28 sps:$4 sm:$0xff]   ;;  %v3160_v23 = vld [vmem:[%s4336_s5 + $0xb8] ss:$28 sps:$4 sm:$0xff]  }
 0x1f3   :  { %2176 = vmatpush1.bf16.msra.mxu1 %v3085_v25  ;;  %2258 = vmatpush1.bf16.msra.mxu0 %v3088_v26  ;;  %v3164_v25 = vld [vmem:[%s4336_s5 + $0xc0] ss:$28 sps:$4 sm:$0xff]   ;;  %v3167_v26 = vld [vmem:[%s4336_s5 + $0xf4] ss:$28 sps:$4 sm:$0xff]  }
 0x1f4   :  { %2177 = vmatprep.subr.bf16.mxu1 %v3093_v27  ;;  %2259 = vmatprep.subr.bf16.mxu0 %v3096_v28  ;;  %v3168_v27 = vld [vmem:[%s4336_s5 + $0x2b8] ss:$28 sps:$4 sm:$0xff]   ;;  %v3165_v28 = vld [vmem:[%s4336_s5 + $0xf0] ss:$28 sps:$4 sm:$0xff]  }
 0x1f7   :  { %2178 = vmatpush1.bf16.msra.mxu1 %v3091_v29  ;;  %2260 = vmatpush1.bf16.msra.mxu0 %v3094_v30  ;;  %v3169_v29 = vld [vmem:[%s4336_s5 + $0xf8] ss:$28 sps:$4 sm:$0xff]   ;;  %v3172_v30 = vld [vmem:[%s4336_s5 + $0x12c] ss:$28 sps:$4 sm:$0xff]  }
 0x1f8   :  { %2179 = vmatprep.subr.bf16.mxu1 %v3099_v31  ;;  %2261 = vmatprep.subr.bf16.mxu0 %v3102_v32  ;;  %v3173_v31 = vld [vmem:[%s4336_s5 + $0x2f0] ss:$28 sps:$4 sm:$0xff]   ;;  %v3170_v32 = vld [vmem:[%s4336_s5 + $0x128] ss:$28 sps:$4 sm:$0xff]  }
 0x1fb   :  { %2180 = vmatpush1.bf16.msra.mxu1 %v3097_v33  ;;  %2262 = vmatpush1.bf16.msra.mxu0 %v3100_v34  ;;  %v3174_v33 = vld [vmem:[%s4336_s5 + $0x130] ss:$28 sps:$4 sm:$0xff]   ;;  %v3177_v34 = vld [vmem:[%s4336_s5 + $0x164] ss:$28 sps:$4 sm:$0xff]  }
 0x1fc   :  { %2181 = vmatprep.subr.bf16.mxu1 %v3105_v35  ;;  %2263 = vmatprep.subr.bf16.mxu0 %v3108_v36  ;;  %v3178_v35 = vld [vmem:[%s4336_s5 + $0x328] ss:$28 sps:$4 sm:$0xff]   ;;  %v3175_v36 = vld [vmem:[%s4336_s5 + $0x160] ss:$28 sps:$4 sm:$0xff]  }
 0x1ff   :  { %2182 = vmatpush1.bf16.msra.mxu1 %v3103_v37  ;;  %2264 = vmatpush1.bf16.msra.mxu0 %v3106_v38  ;;  %v3179_v37 = vld [vmem:[%s4336_s5 + $0x168] ss:$28 sps:$4 sm:$0xff]   ;;  %v3182_v38 = vld [vmem:[%s4336_s5 + $0x19c] ss:$28 sps:$4 sm:$0xff]  }
 0x200   :  { %2183 = vmatprep.subr.bf16.mxu1 %v3111_v39  ;;  %2265 = vmatprep.subr.bf16.mxu0 %v3114_v42  ;;  %v3183_v39 = vld [vmem:[%s4336_s5 + $0x360] ss:$28 sps:$4 sm:$0xff]   ;;  %v3180_v42 = vld [vmem:[%s4336_s5 + $0x198] ss:$28 sps:$4 sm:$0xff]  }
 0x203   :  { %2184 = vmatpush1.bf16.msra.mxu1 %v3109_v43  ;;  %2266 = vmatpush1.bf16.msra.mxu0 %v3112_v44  ;;  %v3184_v43 = vld [vmem:[%s4336_s5 + $0x1a0] ss:$28 sps:$4 sm:$0xff]   ;;  %v3187_v44 = vld [vmem:[%s4336_s5 + $0x1d4] ss:$28 sps:$4 sm:$0xff]  }
 0x204   :  { %2185 = vmatprep.subr.bf16.mxu1 %v3117_v45  ;;  %2267 = vmatprep.subr.bf16.mxu0 %v3120_v47  ;;  %v3188_v45 = vld [vmem:[%s4336_s5 + $0x558] ss:$28 sps:$4 sm:$0xff]   ;;  %v3185_v47 = vld [vmem:[%s4336_s5 + $0x1d0] ss:$28 sps:$4 sm:$0xff]  }
 0x207   :  { %2186 = vmatpush1.bf16.msra.mxu1 %v3115_v48  ;;  %2268 = vmatpush1.bf16.msra.mxu0 %v3118_v49  ;;  %v3189_v48 = vld [vmem:[%s4336_s5 + $0x398] ss:$28 sps:$4 sm:$0xff]   ;;  %v3192_v49 = vld [vmem:[%s4336_s5 + $0x20c] ss:$28 sps:$4 sm:$0xff]  }
 0x208   :  { %2187 = vmatprep.subr.bf16.mxu1 %v3123_v50  ;;  %2269 = vmatprep.subr.bf16.mxu0 %v3126_v51  ;;  %v3193_v50 = vld [vmem:[%s4336_s5 + $0x590] ss:$28 sps:$4 sm:$0xff]   ;;  %v3190_v51 = vld [vmem:[%s4336_s5 + $0x208] ss:$28 sps:$4 sm:$0xff]  }
 0x20b   :  { %2188 = vmatpush1.bf16.msra.mxu1 %v3121_v52  ;;  %2270 = vmatpush1.bf16.msra.mxu0 %v3124_v53  ;;  %v3194_v52 = vld [vmem:[%s4336_s5 + $0x3d0] ss:$28 sps:$4 sm:$0xff]   ;;  %v3197_v53 = vld [vmem:[%s4336_s5 + $0x244] ss:$28 sps:$4 sm:$0xff]  }
 0x20c   :  { %2189 = vmatprep.subr.bf16.mxu1 %v3129_v55  ;;  %2271 = vmatprep.subr.bf16.mxu0 %v3132_v56  ;;  %v3198_v55 = vld [vmem:[%s4336_s5 + $0x5c8] ss:$28 sps:$4 sm:$0xff]   ;;  %v3195_v56 = vld [vmem:[%s4336_s5 + $0x240] ss:$28 sps:$4 sm:$0xff]  }
 0x20f   :  { %2190 = vmatpush1.bf16.msra.mxu1 %v3127_v57  ;;  %2272 = vmatpush1.bf16.msra.mxu0 %v3130_v58  ;;  %v3199_v57 = vld [vmem:[%s4336_s5 + $0x408] ss:$28 sps:$4 sm:$0xff]   ;;  %v3202_v58 = vld [vmem:[%s4336_s5 + $0x27c] ss:$28 sps:$4 sm:$0xff]  }
 0x210   :  { %2191 = vmatprep.subr.bf16.mxu1 %v3135_v61  ;;  %2273 = vmatprep.subr.bf16.mxu0 %v3138_v63  ;;  %v3200_v61 = vld [vmem:[%s4336_s5 + $0x278] ss:$28 sps:$4 sm:$0xff]   ;;  %v3204_v63 = vld [vmem:[%s4336_s5 + $0x440] ss:$28 sps:$4 sm:$0xff]  }
 0x213   :  { %2192 = vmatpush1.bf16.msra.mxu1 %v3133_v0  ;;  %2274 = vmatpush1.bf16.msra.mxu0 %v3136_v40  ;;  %v3207_v0 = vld [vmem:[%s4336_s5 + $0x2b4] ss:$28 sps:$4 sm:$0xff]  }
 0x214   :  { %2193 = vmatprep.subr.bf16.mxu1 %v3141_v3  ;;  %2275 = vmatprep.subr.bf16.mxu0 %v3144_v4  ;;  %v3208_v40 = vld [vmem:[%s4336_s5 + $0x638] ss:$28 sps:$4 sm:$0xff]   ;;  %v3212_v4 = vld [vmem:[%s4336_s5 + $0x2ec] ss:$28 sps:$4 sm:$0xff]  }
 0x215   :  { %v3209_v3 = vld [vmem:[%s4336_s5 + $0x478] ss:$28 sps:$4 sm:$0xff]  }
 0x217   :  { %2194 = vmatpush1.bf16.msra.mxu1 %v3139_v5  ;;  %2276 = vmatpush1.bf16.msra.mxu0 %v3142_v46  ;;  %v3213_v5 = vld [vmem:[%s4336_s5 + $0x670] ss:$28 sps:$4 sm:$0xff]   ;;  %v3210_v46 = vld [vmem:[%s4336_s5 + $0x2e8] ss:$28 sps:$4 sm:$0xff]  }
 0x218   :  { %2286 = vmatprep.subr.bf16.mxu1 %v3147_v7  ;;  %2770 = vmatprep.subr.bf16.mxu0 %v3148_v8  ;;  %v3217_v7 = vld [vmem:[%s4336_s5 + $0x324] ss:$28 sps:$4 sm:$0xff]  }
 0x219   :  { %v3218_v8 = vld [vmem:[%s4336_s5 + $0x6a8] ss:$28 sps:$4 sm:$0xff]  }
 0x21a   :  { %2196 = vmatmul.mubr.bf16.vlgmr.msra.gmra.mrb[4].mxu1 %v4009_v10  ;;  %2278 = vmatmul.mubr.bf16.vlgmr.msra.gmra.mrb[8].mxu0 %v4009_v10 }
 0x21b   :  { %2287 = vmatpush1.bf16.msra.mxu1 %v3145_v9  ;;  %2318 = vmatprep.mubr.bf16.mxu1 %v3797_v59  ;;  %v3215_v9 = vld [vmem:[%s4336_s5 + $0x320] ss:$28 sps:$4 sm:$0xff]  }
 0x21c   :  { %2771 = vmatpush3.bf16.msra.mxu0 %v3149_v11  ;;  %2400 = vmatprep.mubr.bf16.mxu0 %v3797_v59  ;;  %v3159_v59 = vld [vmem:[%s4336_s5 + $0x88] ss:$28 sps:$4 sm:$0xff]  }
 0x21d   :  { %2288 = vmatprep.subr.bf16.mxu1 %v3152_v12  ;;  %2772 = vmatprep.subr.bf16.mxu0 %v3153_v13  ;;  %v3219_v11 = vld [vmem:[%s4336_s5 + $0x4e8] ss:$28 sps:$4 sm:$0xff]   ;;  %v3222_v12 = vld [vmem:[%s4336_s5 + $0x35c] ss:$28 sps:$4 sm:$0xff]  }
 0x21e   :  { %v3223_v13 = vld [vmem:[%s4336_s5 + $0x6e0] ss:$28 sps:$4 sm:$0xff]  }
 0x21f   :  { %2289 = vmatpush1.bf16.msra.mxu1 %v3150_v14  ;;  %v3220_v14 = vld [vmem:[%s4336_s5 + $0x358] ss:$28 sps:$4 sm:$0xff]  }
 0x220   :  { %2773 = vmatpush3.bf16.msra.mxu0 %v3154_v15  ;;  %2290 = vmatprep.subr.bf16.mxu1 %v3157_v16  ;;  %v3224_v15 = vld [vmem:[%s4336_s5 + $0x520] ss:$28 sps:$4 sm:$0xff]   ;;  %v3227_v16 = vld [vmem:[%s4336_s5 + $0x394] ss:$28 sps:$4 sm:$0xff]  }
 0x221   :  { %2774 = vmatprep.subr.bf16.mxu0 %v3158_v17  ;;  %v3225_v17 = vld [vmem:[%s4336_s5 + $0x390] ss:$28 sps:$4 sm:$0xff]  }
 0x223   :  { %2291 = vmatpush1.bf16.msra.mxu1 %v3155_v18  ;;  %v3230_v18 = vld [vmem:[%s4336_s5 + $0x3cc] ss:$28 sps:$4 sm:$0xff]  }
 0x224   :  { %2775 = vmatpush3.bf16.msra.mxu0 %v3159_v59  ;;  %2292 = vmatprep.subr.bf16.mxu1 %v3162_v19  ;;  %v3228_v59 = vld [vmem:[%s4336_s5 + $0x3c8] ss:$28 sps:$4 sm:$0xff]  }
 0x225   :  { %2776 = vmatprep.subr.bf16.mxu0 %v3163_v20  ;;  %v3233_v19 = vld [vmem:[%s4336_s5 + $0x404] ss:$28 sps:$4 sm:$0xff]  }
 0x226   :  { %v3231_v20 = vld [vmem:[%s4336_s5 + $0x400] ss:$28 sps:$4 sm:$0xff]  }
 0x227   :  { %2293 = vmatpush1.bf16.msra.mxu1 %v3160_v23  ;;  %v3239_v23 = vld [vmem:[%s4336_s5 + $0x474] ss:$28 sps:$4 sm:$0xff]  }
 0x228   :  { %2777 = vmatpush3.bf16.msra.mxu0 %v3164_v25  ;;  %2294 = vmatprep.subr.bf16.mxu1 %v3167_v26  ;;  %v3237_v25 = vld [vmem:[%s4336_s5 + $0x470] ss:$28 sps:$4 sm:$0xff]  }
 0x229   :  { %2778 = vmatprep.subr.bf16.mxu0 %v3168_v27  ;;  %v3242_v26 = vld [vmem:[%s4336_s5 + $0x4ac] ss:$28 sps:$4 sm:$0xff]  }
 0x22a   :  { %v3240_v27 = vld [vmem:[%s4336_s5 + $0x4a8] ss:$28 sps:$4 sm:$0xff]  }
 0x22b   :  { %2295 = vmatpush1.bf16.msra.mxu1 %v3165_v28  ;;  %v3245_v28 = vld [vmem:[%s4336_s5 + $0x4e4] ss:$28 sps:$4 sm:$0xff]  }
 0x22c   :  { %2779 = vmatpush3.bf16.msra.mxu0 %v3169_v29  ;;  %2296 = vmatprep.subr.bf16.mxu1 %v3172_v30  ;;  %v3243_v29 = vld [vmem:[%s4336_s5 + $0x4e0] ss:$28 sps:$4 sm:$0xff]  }
 0x22d   :  { %2780 = vmatprep.subr.bf16.mxu0 %v3173_v31  ;;  %v3248_v30 = vld [vmem:[%s4336_s5 + $0x51c] ss:$28 sps:$4 sm:$0xff]  }
 0x22e   :  { %v3246_v31 = vld [vmem:[%s4336_s5 + $0x518] ss:$28 sps:$4 sm:$0xff]  }
 0x22f   :  { %2297 = vmatpush1.bf16.msra.mxu1 %v3170_v32  ;;  %v3251_v32 = vld [vmem:[%s4336_s5 + $0x554] ss:$28 sps:$4 sm:$0xff]  }
 0x230   :  { %2781 = vmatpush3.bf16.msra.mxu0 %v3174_v33  ;;  %2298 = vmatprep.subr.bf16.mxu1 %v3177_v34  ;;  %v3249_v33 = vld [vmem:[%s4336_s5 + $0x550] ss:$28 sps:$4 sm:$0xff]  }
 0x231   :  { %2782 = vmatprep.subr.bf16.mxu0 %v3178_v35  ;;  %v3254_v34 = vld [vmem:[%s4336_s5 + $0x58c] ss:$28 sps:$4 sm:$0xff]  }
 0x232   :  { %v3252_v35 = vld [vmem:[%s4336_s5 + $0x588] ss:$28 sps:$4 sm:$0xff]  }
 0x233   :  { %2299 = vmatpush1.bf16.msra.mxu1 %v3175_v36  ;;  %v3257_v36 = vld [vmem:[%s4336_s5 + $0x5c4] ss:$28 sps:$4 sm:$0xff]  }
 0x234   :  { %2783 = vmatpush3.bf16.msra.mxu0 %v3179_v37  ;;  %2300 = vmatprep.subr.bf16.mxu1 %v3182_v38  ;;  %v3255_v37 = vld [vmem:[%s4336_s5 + $0x5c0] ss:$28 sps:$4 sm:$0xff]  }
 0x235   :  { %2784 = vmatprep.subr.bf16.mxu0 %v3183_v39  ;;  %v3260_v38 = vld [vmem:[%s4336_s5 + $0x5fc] ss:$28 sps:$4 sm:$0xff]  }
 0x236   :  { %v3258_v39 = vld [vmem:[%s4336_s5 + $0x5f8] ss:$28 sps:$4 sm:$0xff]  }
 0x237   :  { %2301 = vmatpush1.bf16.msra.mxu1 %v3180_v42  ;;  %v3263_v42 = vld [vmem:[%s4336_s5 + $0x634] ss:$28 sps:$4 sm:$0xff]  }
 0x238   :  { %2785 = vmatpush3.bf16.msra.mxu0 %v3184_v43  ;;  %2302 = vmatprep.subr.bf16.mxu1 %v3187_v44  ;;  %v3261_v43 = vld [vmem:[%s4336_s5 + $0x630] ss:$28 sps:$4 sm:$0xff]  }
 0x239   :  { %2792 = vmatprep.subr.bf16.mxu0 %v3188_v45  ;;  %v3266_v44 = vld [vmem:[%s4336_s5 + $0x66c] ss:$28 sps:$4 sm:$0xff]  }
 0x23a   :  { %v3264_v45 = vld [vmem:[%s4336_s5 + $0x668] ss:$28 sps:$4 sm:$0xff]  }
 0x23b   :  { %2401 = vmatmul.mubr.bf16.vlgmr.msra.gmra.mrb[12].mxu0 %v3805_v62  ;;  %2303 = vmatpush1.bf16.msra.mxu1 %v3185_v47  ;;  %v3269_v47 = vld [vmem:[%s4336_s5 + $0x6a4] ss:$28 sps:$4 sm:$0xff]  }
 0x23c   :  { %2793 = vmatpush3.bf16.msra.mxu0 %v3189_v48  ;;  %2440 = vmatprep.mubr.bf16.mxu0 %v3815_v1  ;;  %v3267_v48 = vld [vmem:[%s4336_s5 + $0x6a0] ss:$28 sps:$4 sm:$0xff]  }
 0x23d   :  { %2304 = vmatprep.subr.bf16.mxu1 %v3192_v49  ;;  %2794 = vmatprep.subr.bf16.mxu0 %v3193_v50  ;;  %v3272_v49 = vld [vmem:[%s4336_s5 + $0x6dc] ss:$28 sps:$4 sm:$0xff]  }
 0x23e   :  { %v3270_v50 = vld [vmem:[%s4336_s5 + $0x6d8] ss:$28 sps:$4 sm:$0xff]  }
 0x23f   :  { %2305 = vmatpush1.bf16.msra.mxu1 %v3190_v51  ;;  %v933_v51 = vld [vmem:[%s4339_s6] sm:$0xff] }
 0x240   :  { %2795 = vmatpush3.bf16.msra.mxu0 %v3194_v52  ;;  %2306 = vmatprep.subr.bf16.mxu1 %v3197_v53  ;;  %v938_v52 = vrot.slane %v933_v51, %v3580_v22  ;;  %v946_v53 = vrot.slane %v933_v51, %v257_v54 }
 0x241   :  { %2796 = vmatprep.subr.bf16.mxu0 %v3198_v55  ;;  %v942_v55 = vrot.slane %v933_v51, %v3586_v24 }
 0x243   :  { %2307 = vmatpush1.bf16.msra.mxu1 %v3195_v56  ;;  %v950_v56 = vrot.slane %v933_v51, %v261_v41 }
 0x244   :  { %2797 = vmatpush3.bf16.msra.mxu0 %v3199_v57  ;;  %2308 = vmatprep.subr.bf16.mxu1 %v3202_v58 }
 0x245   :  { %2798 = vmatprep.subr.bf16.mxu0 %v3203_v60 }
 0x247   :  { %2309 = vmatpush1.bf16.msra.mxu1 %v3200_v61 }
 0x248   :  { %2799 = vmatpush3.bf16.msra.mxu0 %v3204_v63  ;;  %2310 = vmatprep.subr.bf16.mxu1 %v3207_v0 }
 0x249   :  { %2800 = vmatprep.subr.bf16.mxu0 %v3208_v40 }
 0x24b   :  { %2311 = vmatpush1.bf16.msra.mxu1 %v3205_v2 }
 0x24c   :  { %2801 = vmatpush3.bf16.msra.mxu0 %v3209_v3  ;;  %2312 = vmatprep.subr.bf16.mxu1 %v3212_v4 }
 0x24d   :  { %2802 = vmatprep.subr.bf16.mxu0 %v3213_v5 }
 0x24f   :  { %2313 = vmatpush1.bf16.msra.mxu1 %v3210_v46 }
 0x250   :  { %2803 = vmatpush3.bf16.msra.mxu0 %v3214_v6  ;;  %2314 = vmatprep.subr.bf16.mxu1 %v3217_v7 }
 0x251   :  { %2804 = vmatprep.subr.bf16.mxu0 %v3218_v8 }
 0x253   :  { %2315 = vmatpush1.bf16.msra.mxu1 %v3215_v9 }
 0x254   :  { %2805 = vmatpush3.bf16.msra.mxu0 %v3219_v11  ;;  %2316 = vmatprep.subr.bf16.mxu1 %v3222_v12  ;;  %v961_v11 = vsub.s32 6, %v3577_v21 }
 0x255   :  { %2806 = vmatprep.subr.bf16.mxu0 %v3223_v13 }
 0x256   :  { %v962_v12 = vrot.slane %v933_v51, %v961_v11 }
 0x257   :  { %2317 = vmatpush1.bf16.msra.mxu1 %v3220_v14 }
 0x258   :  { %2807 = vmatpush3.bf16.msra.mxu0 %v3224_v15  ;;  %2327 = vmatprep.subr.bf16.mxu1 %v3227_v16 }
 0x25a   :  { %2319 = vmatmul.mubr.bf16.vlgmr.msra.gmra.mrb[8].mxu1 %v3805_v62  ;;  %v3236_v62 = vld [vmem:[%s4336_s5 + $0x43c] ss:$28 sps:$4 sm:$0xff]  }
 0x25b   :  { %2441 = vmatmul.mubr.bf16.vlgmr.msra.gmra.mrb[16].mxu0 %v4009_v10  ;;  %2328 = vmatpush1.bf16.msra.mxu1 %v3225_v17 }
 0x25c   :  { %2359 = vmatprep.mubr.bf16.mxu1 %v3815_v1  ;;  %2329 = vmatprep.subr.bf16.mxu1 %v3230_v18  ;;  %v3234_v1 = vld [vmem:[%s4336_s5 + $0x438] ss:$28 sps:$4 sm:$0xff]  }
 0x25f   :  { %2330 = vmatpush1.bf16.msra.mxu1 %v3228_v59 }
 0x260   :  { %2331 = vmatprep.subr.bf16.mxu1 %v3233_v19 }
 0x263   :  { %2332 = vmatpush1.bf16.msra.mxu1 %v3231_v20  ;;  %v953_v20 = vsub.s32 4, %v3577_v21 }
 0x264   :  { %2333 = vmatprep.subr.bf16.mxu1 %v3236_v62  ;;  %v957_v62 = vsub.s32 5, %v3577_v21 }
 0x267   :  { %2334 = vmatpush1.bf16.msra.mxu1 %v3234_v1  ;;  %v954_v1 = vrot.slane %v933_v51, %v953_v20 }
 0x268   :  { %2335 = vmatprep.subr.bf16.mxu1 %v3239_v23  ;;  %v958_v23 = vrot.slane %v933_v51, %v957_v62 }
 0x26b   :  { %2336 = vmatpush1.bf16.msra.mxu1 %v3237_v25 }
 0x26c   :  { %2337 = vmatprep.subr.bf16.mxu1 %v3242_v26 }
 0x26f   :  { %2338 = vmatpush1.bf16.msra.mxu1 %v3240_v27 }
 0x270   :  { %2339 = vmatprep.subr.bf16.mxu1 %v3245_v28 }
 0x273   :  { %2340 = vmatpush1.bf16.msra.mxu1 %v3243_v29 }
 0x274   :  { %2341 = vmatprep.subr.bf16.mxu1 %v3248_v30 }
 0x277   :  { %2342 = vmatpush1.bf16.msra.mxu1 %v3246_v31 }
 0x278   :  { %2343 = vmatprep.subr.bf16.mxu1 %v3251_v32 }
 0x27b   :  { %2344 = vmatpush1.bf16.msra.mxu1 %v3249_v33 }
 0x27c   :  { %2345 = vmatprep.subr.bf16.mxu1 %v3254_v34 }
 0x27f   :  { %2346 = vmatpush1.bf16.msra.mxu1 %v3252_v35 }
 0x280   :  { %2347 = vmatprep.subr.bf16.mxu1 %v3257_v36 }
 0x283   :  { %2348 = vmatpush1.bf16.msra.mxu1 %v3255_v37 }
 0x284   :  { %2349 = vmatprep.subr.bf16.mxu1 %v3260_v38 }
 0x287   :  { %2350 = vmatpush1.bf16.msra.mxu1 %v3258_v39 }
 0x288   :  { %2351 = vmatprep.subr.bf16.mxu1 %v3263_v42 }
 0x28b   :  { %2352 = vmatpush1.bf16.msra.mxu1 %v3261_v43 }
 0x28c   :  { %2353 = vmatprep.subr.bf16.mxu1 %v3266_v44 }
 0x28f   :  { %2354 = vmatpush1.bf16.msra.mxu1 %v3264_v45 }
 0x290   :  { %2355 = vmatprep.subr.bf16.mxu1 %v3269_v47 }
 0x293   :  { %2356 = vmatpush1.bf16.msra.mxu1 %v3267_v48 }
 0x294   :  { %2357 = vmatprep.subr.bf16.mxu1 %v3272_v49 }
 0x297   :  { %2358 = vmatpush1.bf16.msra.mxu1 %v3270_v50 }
 0x29a   :  { %2360 = vmatmul.mubr.bf16.vlgmr.msra.gmra.mrb[8].mxu1 %v4009_v10 }
 0x2ed   :  { %v2197_v57 = vpop.f32.mrb[4].mxu1  ;;  %v2279_v58 = vpop.f32.mrb[8].mxu0 }
 0x2ee   :  { %v2814_v60 = vadd.f32 %v2197_v57, %v938_v52  ;;  %v2816_v61 = vadd.f32 %v2279_v58, %v946_v53  ;;  %v2199_v63 = vpop.f32.mrb[5].mxu1  ;;  %v2281_v10 = vpop.f32.mrb[9].mxu0 }
 0x2ef   :  { %v2815_v0 = vadd.f32 %v2199_v63, %v942_v55  ;;  %v2817_v40 = vadd.f32 %v2281_v10, %v950_v56  ;;  %v2201_v2 = vpop.f32.mrb[6].mxu1  ;;  %v2283_v3 = vpop.f32.mrb[10].mxu0 }
 0x2f0   :  { %3273 = vtanh.f32 %v2814_v60  ;;  %v2202_v22 = vpop.f32.mrb[7].mxu1  ;;  %v2284_v4 = vpop.f32.mrb[11].mxu0 }
 0x2f1   :  { %3275 = vtanh.f32 %v2816_v61 }
 0x2f2   :  { %3277 = vtanh.f32 %v2815_v0 }
 0x2f3   :  { %3279 = vtanh.f32 %v2817_v40 }
 0x2fa   :  { %v3274_v24 = vpop.eup %3273 }
 0x2fb   :  { %v3276_v54 = vpop.eup %3275  ;;  %2455 = vst [vmem:[%s4340_s7] sm:$0xff] %v3274_v24 }
 0x2fc   :  { %v3278_v41 = vpop.eup %3277  ;;  %2457 = vst [vmem:[%s4340_s7 + $0x10] sm:$0xff] %v3276_v54 }
 0x2fd   :  { %v3280_v5 = vpop.eup %3279  ;;  %2456 = vst [vmem:[%s4340_s7 + $0x8] sm:$0xff] %v3278_v41 }
 0x2fe   :  { %2458 = vst [vmem:[%s4340_s7 + $0x18] sm:$0xff] %v3280_v5 }
 0x30e   :  { %v2786_v46 = vpop.f32.mrb[12].mxu0 }
 0x30f   :  { %v2787_v6 = vpop.f32.mrb[13].mxu0 }
 0x310   :  { %v2788_v7 = vadd.f32 %v2787_v6, %v2786_v46  ;;  %v2789_v8 = vpop.f32.mrb[14].mxu0 }
 0x311   :  { %v2790_v9 = vpop.f32.mrb[15].mxu0 }
 0x312   :  { %v2403_v15 = vadd.f32 %v2788_v7, %v962_v12 }
 0x32e   :  { %v2808_v13 = vpop.f32.mrb[16].mxu0 }
 0x32f   :  { %v2809_v14 = vpop.f32.mrb[17].mxu0 }
 0x330   :  { %v2810_v16 = vadd.f32 %v2809_v14, %v2808_v13  ;;  %v2811_v17 = vpop.f32.mrb[18].mxu0 }
 0x331   :  { %v2812_v18 = vpop.f32.mrb[19].mxu0 }
 0x332   :  { %v2443_v59 = vadd.f32 %v2810_v16, %v2403_v15 }
 0x334   :  { %3281 = vtanh.f32 %v2443_v59 }
 0x33e   :  { %v3282_v19 = vpop.eup %3281 }
 0x33f   :  { %2461 = vst [vmem:[%s4340_s7 + $0x30] sm:$0xff] %v3282_v19 }
 0x36d   :  { %v2361_v25 = vpop.f32.mrb[8].mxu1 }
 0x36e   :  { %v2818_v26 = vadd.f32 %v2361_v25, %v954_v1  ;;  %v2363_v27 = vpop.f32.mrb[9].mxu1 }
 0x36f   :  { %v2819_v28 = vadd.f32 %v2363_v27, %v958_v23  ;;  %v2365_v29 = vpop.f32.mrb[10].mxu1 }
 0x370   :  { %3283 = vtanh.f32 %v2818_v26  ;;  %v2366_v30 = vpop.f32.mrb[11].mxu1 }
 0x371   :  { %3285 = vtanh.f32 %v2819_v28 }
 0x37a   :  { %v3284_v31 = vpop.eup %3283 }
 0x37b   :  { %v3286_v32 = vpop.eup %3285  ;;  %2459 = vst [vmem:[%s4340_s7 + $0x20] sm:$0xff] %v3284_v31 }
 0x37c   :  { %2460 = vst [vmem:[%s4340_s7 + $0x28] sm:$0xff] %v3286_v32 }

</bundles_post_ra>
